<compile_context>
chip_gen: v7x
topology: tpu7x:2x2x1
jax: 0.10.0
libtpu: 0.0.40
codegen_flags: <defaults>
</compile_context>

<pallas_src>
import jax
import jax.numpy as jnp
from jax.experimental import pallas as pl
from jax.experimental.pallas import tpu as pltpu

# ----------------------------- model dimensions -----------------------------
B = 2             # batch
T = 8             # mel timesteps (sequence length)
C_IN = 4          # args.DiT.in_channels
HIDDEN = 32       # args.DiT.hidden_dim
CONTENT_DIM = 16  # args.DiT.content_dim
STYLE_DIM = 8     # args.style_encoder.dim
FREQ_DIM = 256    # TimestepEmbedder.frequency_embedding_size
HALF = FREQ_DIM // 2
T_SCALE = 1000.0
MAX_PERIOD = 10000.0

BT = B * T                                     # flattened row count
ACT_DIM = 2 * C_IN + STYLE_DIM + CONTENT_DIM   # [x | prompt_x | style | cond] = 32
OUT_PAD = 128                                  # lane-dense padded output width
assert HALF == OUT_PAD                         # freqs row shares the 128-lane slab

# Weight+bias slab row offsets (all multiples of 8 -> clean (8,128) tile slices).
OFF_TE1 = 0                        # t_embedder.mlp[0]              : (256, 32)
OFF_TE2 = OFF_TE1 + FREQ_DIM       # t_embedder.mlp[2]              : (32, 32)
OFF_M = OFF_TE2 + HIDDEN           # merge (cond_projection folded) : (32, 32)
K_S = HIDDEN + 2 * C_IN            # skip K = [x_in | x | zero rows for prompt_x] = 40
OFF_S = OFF_M + ACT_DIM            # skip_linear @ final_mlp[0]     : (40, 32)
OFF_B = OFF_S + K_S                # bias rows                      : (8, 32)
K_TOTAL = OFF_B + 8                # total slab rows = 368
assert all(o % 8 == 0 for o in (OFF_TE2, OFF_M, OFF_S, OFF_B, K_TOTAL))


# ----------------------------- fused Pallas kernel ---------------------------
def dit_fused_kernel(act_ref, wb_ref, big_ref, out_ref):
    """Whole DiT forward (mlp final layer, eval) in one invocation.

    act_ref: (BT+B, 32)  VMEM  rows 0..BT-1 = [x | prompt_x | style | cond],
                               rows BT..    = t broadcast across lanes
    wb_ref:  (368, 32)   VMEM  packed weight+bias slab (layout in OFF_* consts)
    big_ref: (34, 128)   VMEM  [wf2 pad (32) | bf2 pad (1) | T_SCALE*freqs (1)]
    out_ref: (BT+B, 128) VMEM  rows 0..BT-1 lanes 0..C_IN-1 = mlp output,
                               rows BT..    lanes 0..HIDDEN-1 = t1
    """
    # MXU operands in bf16 (f32 accumulate); all elementwise math stays f32.
    dot = lambda a, b: jnp.dot(a.astype(jnp.bfloat16), b.astype(jnp.bfloat16),
                               preferred_element_type=jnp.float32)
    bias = wb_ref[OFF_B:OFF_B + 8, :]                              # (8, 32) f32

    # ---- TimestepEmbedder: sinusoidal embedding -> Linear -> SiLU -> Linear
    t_col = act_ref[BT:BT + B, 0:1]                                # (B, 1)
    args = t_col * big_ref[HIDDEN + 1:HIDDEN + 2, :]               # (B, 128)
    emb = jnp.concatenate([jnp.cos(args), jnp.sin(args)], axis=-1)  # (B, 256)
    h = dot(emb, wb_ref[OFF_TE1:OFF_TE1 + FREQ_DIM, :]) + bias[0:1, :]
    h = h * jax.nn.sigmoid(h)                                      # SiLU (f32)
    t1 = dot(h, wb_ref[OFF_TE2:OFF_TE2 + HIDDEN, :]) + bias[1:2, :]

    # ---- x_in = cond_x_merge_linear(cat([x, prompt_x, cond, style], -1))
    # cond_projection is folded into the merge weights at init (exact), so this
    # is a single K=32 dot over the host-packed activation slab.
    act = act_ref[0:BT, :]                                         # (BT, 32)
    x_in = dot(act, wb_ref[OFF_M:OFF_M + ACT_DIM, :]) + bias[2:3, :]

    # TODO(synk): gpt_fast Transformer backbone (adaLN + mask + t1 conditioning)
    # is not provided in the reference source; identity stand-in here.
    x_res = x_in

    # ---- skip_linear folded into final_mlp[0] (exact: adjacent linears).
    # Tail lanes are [x | prompt_x]; prompt_x hits zero weight rows in the slab.
    skip_in = jnp.concatenate([x_res, act[:, :2 * C_IN]], axis=-1)  # (BT, 40)
    h2 = dot(skip_in, wb_ref[OFF_S:OFF_S + K_S, :]) + bias[3:4, :]
    h2 = h2 * jax.nn.sigmoid(h2)                                   # SiLU (f32)

    # ---- final_mlp[2], lane-padded to 128 cols (unmasked lane-dense store);
    # t1 goes into the spare rows so the embedder path is not DCE'd.
    out = dot(h2, big_ref[0:HIDDEN, :]) + big_ref[HIDDEN:HIDDEN + 1, :]  # (BT,128)
    t1_pad = jnp.concatenate(
        [t1, jnp.zeros((B, OUT_PAD - HIDDEN), jnp.float32)], axis=-1)    # (B,128)
    out_ref[...] = jnp.concatenate([out, t1_pad], axis=0)                # (BT+B,128)


# --------------------------------- wrapper ------------------------------------
def dit_forward(x, prompt_x, x_lens, t, style, cond, params, return_t1=False):
    """Mirrors DiT.forward (eval, mlp final layer). x/prompt_x: (B, C_IN, T)."""
    del x_lens  # mask only conditions the (identity) transformer stand-in

    # Layout plumbing on the host: NCT -> NTC, flatten batch*time, pre-pack the
    # concat the module builds ([x, prompt_x, style.repeat, cond]) plus t rows.
    x_t = jnp.transpose(x, (0, 2, 1)).astype(jnp.float32)            # (B, T, C)
    p_t = jnp.transpose(prompt_x, (0, 2, 1)).astype(jnp.float32)     # (B, T, C)
    style_rep = jnp.broadcast_to(
        style.astype(jnp.float32)[:, None, :], (B, T, STYLE_DIM))    # (B, T, Ds)
    cond_f = cond.astype(jnp.float32)                                # (B, T, Dc)
    act = jnp.concatenate([x_t, p_t, style_rep, cond_f],
                          axis=-1).reshape(BT, ACT_DIM)              # (BT, 32)
    t_rows = jnp.broadcast_to(t.astype(jnp.float32)[:, None], (B, ACT_DIM))
    act_full = jnp.concatenate([act, t_rows], axis=0)                # (BT+B, 32)

    vmem = pl.BlockSpec(memory_space=pltpu.MemorySpace.VMEM)
    out_pad = pl.pallas_call(
        dit_fused_kernel,
        out_shape=jax.ShapeDtypeStruct((BT + B, OUT_PAD), jnp.float32),
        in_specs=[vmem, vmem, vmem],       # 3 operands, single step, no grid
        out_specs=vmem,
    )(act_full, params["wb_slab"], params["big128"])

    out = jnp.transpose(out_pad[:BT, :C_IN].reshape(B, T, C_IN), (0, 2, 1))
    t1 = out_pad[BT:BT + B, :HIDDEN]
    if return_t1:
        return out, t1
    return out


# --------------------------- pure-JAX reference -------------------------------
def reference_forward(x, prompt_x, t, style, cond, p):
    """Un-folded f32 reference matching the PyTorch module semantics."""
    args = T_SCALE * t[:, None].astype(jnp.float32) * p["freqs"][None, :]
    emb = jnp.concatenate([jnp.cos(args), jnp.sin(args)], axis=-1)
    h = emb @ p["te_w1"] + p["te_b1"]
    h = h * jax.nn.sigmoid(h)
    t1 = h @ p["te_w2"] + p["te_b2"]

    cond_h = cond @ p["wc"] + p["bc"]
    x_t = jnp.transpose(x, (0, 2, 1))
    p_t = jnp.transpose(prompt_x, (0, 2, 1))
    style_rep = jnp.repeat(style[:, None, :], T, axis=1)
    x_cat = jnp.concatenate([x_t, p_t, cond_h, style_rep], axis=-1)
    wm = jnp.concatenate([p["wm_x"], p["wm_p"], p["wm_c"], p["wm_s"]], axis=0)
    x_in = x_cat @ wm + p["bm"]
    x_res = x_in  # transformer identity (see TODO in kernel)
    ws = jnp.concatenate([p["ws_h"], p["ws_x"]], axis=0)
    x_res = jnp.concatenate([x_res, x_t], axis=-1) @ ws + p["bs"]
    h2 = x_res @ p["wf1"] + p["bf1"]
    h2 = h2 * jax.nn.sigmoid(h2)
    out = h2 @ p["wf2"] + p["bf2"]
    return jnp.transpose(out, (0, 2, 1)), t1


# ------------------------------ param init ------------------------------------
def init_params(key):
    ks = jax.random.split(key, 18)
    n = lambda k, shape: (0.05 * jax.random.normal(k, shape)).astype(jnp.float32)
    freqs = jnp.exp(-jnp.log(MAX_PERIOD)
                    * jnp.arange(HALF, dtype=jnp.float32) / HALF)
    p = {
        "freqs": freqs,
        # TimestepEmbedder MLP
        "te_w1": n(ks[0], (FREQ_DIM, HIDDEN)), "te_b1": n(ks[1], (HIDDEN,)),
        "te_w2": n(ks[2], (HIDDEN, HIDDEN)), "te_b2": n(ks[3], (HIDDEN,)),
        # cond_projection
        "wc": n(ks[4], (CONTENT_DIM, HIDDEN)), "bc": n(ks[5], (HIDDEN,)),
        # cond_x_merge_linear (split by concat segment [x, prompt_x, cond, style])
        "wm_x": n(ks[6], (C_IN, HIDDEN)), "wm_p": n(ks[7], (C_IN, HIDDEN)),
        "wm_c": n(ks[8], (HIDDEN, HIDDEN)), "wm_s": n(ks[9], (STYLE_DIM, HIDDEN)),
        "bm": n(ks[10], (HIDDEN,)),
        # skip_linear (split by concat segment [x_res, x])
        "ws_h": n(ks[11], (HIDDEN, HIDDEN)), "ws_x": n(ks[12], (C_IN, HIDDEN)),
        "bs": n(ks[13], (HIDDEN,)),
        # final_mlp
        "wf1": n(ks[14], (HIDDEN, HIDDEN)), "bf1": n(ks[15], (HIDDEN,)),
        "wf2": n(ks[16], (HIDDEN, C_IN)), "bf2": n(ks[17], (C_IN,)),
    }

    # ---- host-side algebraic folds (exact: adjacent linears, no nonlinearity)
    # cond_projection -> cond_x_merge_linear; rows ordered [x | prompt_x | style | cond]
    w_merge = jnp.concatenate(
        [p["wm_x"], p["wm_p"], p["wm_s"], p["wc"] @ p["wm_c"]], axis=0)   # (32, 32)
    b_merge = p["bc"] @ p["wm_c"] + p["bm"]
    # skip_linear -> final_mlp[0]; rows ordered [x_in | x | zero rows for prompt_x]
    w_skipf1 = jnp.concatenate(
        [p["ws_h"] @ p["wf1"], p["ws_x"] @ p["wf1"],
         jnp.zeros((C_IN, HIDDEN), jnp.float32)], axis=0)                 # (40, 32)
    b_skipf1 = p["bs"] @ p["wf1"] + p["bf1"]

    # ---- packed slabs consumed by the fused Pallas kernel (built once) ----
    zb = jnp.zeros((HIDDEN,), jnp.float32)
    bias_rows = jnp.stack(
        [p["te_b1"], p["te_b2"], b_merge, b_skipf1, zb, zb, zb, zb], axis=0)  # (8, 32)
    p["wb_slab"] = jnp.concatenate(
        [p["te_w1"], p["te_w2"], w_merge, w_skipf1, bias_rows], axis=0)
    assert p["wb_slab"].shape == (K_TOTAL, HIDDEN)

    wf2_pad = jnp.zeros((HIDDEN, OUT_PAD), jnp.float32).at[:, :C_IN].set(p["wf2"])
    bf2_pad = jnp.zeros((1, OUT_PAD), jnp.float32).at[:, :C_IN].set(p["bf2"])
    sfreqs = (T_SCALE * freqs).reshape(1, HALF)        # T_SCALE baked in at init
    p["big128"] = jnp.concatenate([wf2_pad, bf2_pad, sfreqs], axis=0)     # (34, 128)
    return p


# --------------------------------- main ---------------------------------------
if __name__ == "__main__":
    key = jax.random.PRNGKey(0)
    kx, kp, kt, ks_, kc, kparam = jax.random.split(key, 6)

    x = jax.random.normal(kx, (B, C_IN, T), dtype=jnp.float32)
    prompt_x = jax.random.normal(kp, (B, C_IN, T), dtype=jnp.float32)
    x_lens = jnp.full((B,), T, dtype=jnp.int32)
    t = jax.random.uniform(kt, (B,), dtype=jnp.float32)
    style = jax.random.normal(ks_, (B, STYLE_DIM), dtype=jnp.float32)
    cond = jax.random.normal(kc, (B, T, CONTENT_DIM), dtype=jnp.float32)

    params = init_params(kparam)

    out, t1 = dit_forward(x, prompt_x, x_lens, t, style, cond, params,
                          return_t1=True)
    out = jax.block_until_ready(out)
    t1 = jax.block_until_ready(t1)

    ref_out, ref_t1 = reference_forward(x, prompt_x, t, style, cond, params)
    ref_out = jax.block_until_ready(ref_out)

    assert out.shape == (B, C_IN, T), out.shape
    assert t1.shape == (B, HIDDEN), t1.shape
    assert jnp.all(jnp.isfinite(out))
    # Tolerances cover the bf16 MXU operand rounding (f32 accumulation).
    assert jnp.allclose(out, ref_out, atol=1e-2, rtol=1e-2), \
        float(jnp.max(jnp.abs(out - ref_out)))
    assert jnp.allclose(t1, ref_t1, atol=1e-2, rtol=1e-2), \
        float(jnp.max(jnp.abs(t1 - ref_t1)))
    print("KERNEL_OK")
</pallas_src>

<mosaic_0001>
module attributes {stable_mosaic.version = 11 : i64} {
  func.func @dit_fused_kernel(%arg0: memref<18x32xf32, #tpu.memory_space<vmem>>, %arg1: memref<368x32xf32, #tpu.memory_space<vmem>>, %arg2: memref<34x128xf32, #tpu.memory_space<vmem>>, %arg3: memref<18x128xf32, #tpu.memory_space<vmem>>) attributes {dimension_semantics = [], scalar_prefetch = 0 : i64, scratch_operands = 0 : i64, tpu.core_type = #tpu.core_type<tc>} {
    %c360 = arith.constant 360 : index
    %c0 = arith.constant 0 : index
    %0 = vector.load %arg1[%c360, %c0] : memref<368x32xf32, #tpu.memory_space<vmem>>, vector<8x32xf32>
    %c16 = arith.constant 16 : index
    %c0_0 = arith.constant 0 : index
    %1 = vector.load %arg0[%c16, %c0_0] : memref<18x32xf32, #tpu.memory_space<vmem>>, vector<2x1xf32>
    %c33 = arith.constant 33 : index
    %c0_1 = arith.constant 0 : index
    %2 = vector.load %arg2[%c33, %c0_1] : memref<34x128xf32, #tpu.memory_space<vmem>>, vector<1x128xf32>
    %3 = vector.broadcast %1 : vector<2x1xf32> to vector<2x128xf32>
    %4 = vector.broadcast %2 : vector<1x128xf32> to vector<2x128xf32>
    %5 = arith.mulf %3, %4 : vector<2x128xf32>
    %6 = math.cos %5 : vector<2x128xf32>
    %7 = math.sin %5 : vector<2x128xf32>
    %8 = tpu.concatenate %6, %7 in 1 : vector<2x128xf32>, vector<2x128xf32> -> vector<2x256xf32>
    %c0_2 = arith.constant 0 : index
    %c0_3 = arith.constant 0 : index
    %9 = vector.load %arg1[%c0_2, %c0_3] : memref<368x32xf32, #tpu.memory_space<vmem>>, vector<256x32xf32>
    %10 = arith.truncf %8 : vector<2x256xf32> to vector<2x256xbf16>
    %11 = arith.truncf %9 : vector<256x32xf32> to vector<256x32xbf16>
    %cst = arith.constant dense<0.000000e+00> : vector<2x32xf32>
    %12 = tpu.matmul %10, %11, %cst {dimension_numbers = #tpu.dot_dimension_numbers<[1], [0], [0], [1], [0, 0, 1, 1], [], []>} : vector<2x256xbf16>, vector<256x32xbf16>, vector<2x32xf32> -> vector<2x32xf32>
    %13 = vector.extract_strided_slice %0 {offsets = [0, 0], sizes = [1, 32], strides = [1, 1]} : vector<8x32xf32> to vector<1x32xf32>
    %14 = vector.broadcast %13 : vector<1x32xf32> to vector<2x32xf32>
    %15 = arith.addf %12, %14 : vector<2x32xf32>
    %16 = arith.negf %15 : vector<2x32xf32>
    %17 = math.exp %16 : vector<2x32xf32>
    %cst_4 = arith.constant 1.000000e+00 : f32
    %18 = vector.broadcast %cst_4 : f32 to vector<2x32xf32>
    %19 = arith.addf %18, %17 : vector<2x32xf32>
    %20 = arith.divf %18, %19 : vector<2x32xf32>
    %21 = arith.mulf %15, %20 : vector<2x32xf32>
    %c256 = arith.constant 256 : index
    %c0_5 = arith.constant 0 : index
    %22 = vector.load %arg1[%c256, %c0_5] : memref<368x32xf32, #tpu.memory_space<vmem>>, vector<32x32xf32>
    %23 = arith.truncf %21 : vector<2x32xf32> to vector<2x32xbf16>
    %24 = arith.truncf %22 : vector<32x32xf32> to vector<32x32xbf16>
    %cst_6 = arith.constant dense<0.000000e+00> : vector<2x32xf32>
    %25 = tpu.matmul %23, %24, %cst_6 {dimension_numbers = #tpu.dot_dimension_numbers<[1], [0], [0], [1], [0, 0, 1, 1], [], []>} : vector<2x32xbf16>, vector<32x32xbf16>, vector<2x32xf32> -> vector<2x32xf32>
    %26 = vector.extract_strided_slice %0 {offsets = [1, 0], sizes = [1, 32], strides = [1, 1]} : vector<8x32xf32> to vector<1x32xf32>
    %27 = vector.broadcast %26 : vector<1x32xf32> to vector<2x32xf32>
    %28 = arith.addf %25, %27 : vector<2x32xf32>
    %c0_7 = arith.constant 0 : index
    %c0_8 = arith.constant 0 : index
    %29 = vector.load %arg0[%c0_7, %c0_8] : memref<18x32xf32, #tpu.memory_space<vmem>>, vector<16x32xf32>
    %c288 = arith.constant 288 : index
    %c0_9 = arith.constant 0 : index
    %30 = vector.load %arg1[%c288, %c0_9] : memref<368x32xf32, #tpu.memory_space<vmem>>, vector<32x32xf32>
    %31 = arith.truncf %29 : vector<16x32xf32> to vector<16x32xbf16>
    %32 = arith.truncf %30 : vector<32x32xf32> to vector<32x32xbf16>
    %cst_10 = arith.constant dense<0.000000e+00> : vector<16x32xf32>
    %33 = tpu.matmul %31, %32, %cst_10 {dimension_numbers = #tpu.dot_dimension_numbers<[1], [0], [0], [1], [0, 0, 1, 1], [], []>} : vector<16x32xbf16>, vector<32x32xbf16>, vector<16x32xf32> -> vector<16x32xf32>
    %34 = vector.extract_strided_slice %0 {offsets = [2, 0], sizes = [1, 32], strides = [1, 1]} : vector<8x32xf32> to vector<1x32xf32>
    %35 = vector.broadcast %34 : vector<1x32xf32> to vector<16x32xf32>
    %36 = arith.addf %33, %35 : vector<16x32xf32>
    %37 = vector.extract_strided_slice %29 {offsets = [0, 0], sizes = [16, 8], strides = [1, 1]} : vector<16x32xf32> to vector<16x8xf32>
    %38 = tpu.concatenate %36, %37 in 1 : vector<16x32xf32>, vector<16x8xf32> -> vector<16x40xf32>
    %c320 = arith.constant 320 : index
    %c0_11 = arith.constant 0 : index
    %39 = vector.load %arg1[%c320, %c0_11] : memref<368x32xf32, #tpu.memory_space<vmem>>, vector<40x32xf32>
    %40 = arith.truncf %38 : vector<16x40xf32> to vector<16x40xbf16>
    %41 = arith.truncf %39 : vector<40x32xf32> to vector<40x32xbf16>
    %cst_12 = arith.constant dense<0.000000e+00> : vector<16x32xf32>
    %42 = tpu.matmul %40, %41, %cst_12 {dimension_numbers = #tpu.dot_dimension_numbers<[1], [0], [0], [1], [0, 0, 1, 1], [], []>} : vector<16x40xbf16>, vector<40x32xbf16>, vector<16x32xf32> -> vector<16x32xf32>
    %43 = vector.extract_strided_slice %0 {offsets = [3, 0], sizes = [1, 32], strides = [1, 1]} : vector<8x32xf32> to vector<1x32xf32>
    %44 = vector.broadcast %43 : vector<1x32xf32> to vector<16x32xf32>
    %45 = arith.addf %42, %44 : vector<16x32xf32>
    %46 = arith.negf %45 : vector<16x32xf32>
    %47 = math.exp %46 : vector<16x32xf32>
    %cst_13 = arith.constant 1.000000e+00 : f32
    %48 = vector.broadcast %cst_13 : f32 to vector<16x32xf32>
    %49 = arith.addf %48, %47 : vector<16x32xf32>
    %50 = arith.divf %48, %49 : vector<16x32xf32>
    %51 = arith.mulf %45, %50 : vector<16x32xf32>
    %c0_14 = arith.constant 0 : index
    %c0_15 = arith.constant 0 : index
    %52 = vector.load %arg2[%c0_14, %c0_15] : memref<34x128xf32, #tpu.memory_space<vmem>>, vector<32x128xf32>
    %53 = arith.truncf %51 : vector<16x32xf32> to vector<16x32xbf16>
    %54 = arith.truncf %52 : vector<32x128xf32> to vector<32x128xbf16>
    %cst_16 = arith.constant dense<0.000000e+00> : vector<16x128xf32>
    %55 = tpu.matmul %53, %54, %cst_16 {dimension_numbers = #tpu.dot_dimension_numbers<[1], [0], [0], [1], [0, 0, 1, 1], [], []>} : vector<16x32xbf16>, vector<32x128xbf16>, vector<16x128xf32> -> vector<16x128xf32>
    %c32 = arith.constant 32 : index
    %c0_17 = arith.constant 0 : index
    %56 = vector.load %arg2[%c32, %c0_17] : memref<34x128xf32, #tpu.memory_space<vmem>>, vector<1x128xf32>
    %57 = vector.broadcast %56 : vector<1x128xf32> to vector<16x128xf32>
    %58 = arith.addf %55, %57 : vector<16x128xf32>
    %cst_18 = arith.constant 0.000000e+00 : f32
    %59 = vector.broadcast %cst_18 : f32 to vector<2x96xf32>
    %60 = tpu.concatenate %28, %59 in 1 : vector<2x32xf32>, vector<2x96xf32> -> vector<2x128xf32>
    %61 = tpu.concatenate %58, %60 in 0 : vector<16x128xf32>, vector<2x128xf32> -> vector<18x128xf32>
    %c0_19 = arith.constant 0 : index
    %c0_20 = arith.constant 0 : index
    %62 = vector.load %arg3[%c0_19, %c0_20] : memref<18x128xf32, #tpu.memory_space<vmem>>, vector<18x128xf32>
    tpu.vector_store %arg3[%c0_19, %c0_20], %61 {strides = array<i32>} : memref<18x128xf32, #tpu.memory_space<vmem>>, vector<18x128xf32>,
    return
  }
}

</mosaic_0001>

<bundles_post_ra>
// kernel: tpu_custom_call.1
= control target key start
LH: loop header
LB: loop body
LE: loop exit
PB: predicated region body
PF: predicated region fallthrough
CT: control target
= control target key end

     0   :  { %v760_v1 = vmov 0   ;;  %s1026_s0 = inlined_call_operand.vmem [shape: f32[18,32], index: 0, kind: input, shape index: {}]   ;;  %s1027_s1 = inlined_call_operand.vmem [shape: f32[368,32], index: 1, kind: input, shape index: {}]   ;;  %s1028_s2 = inlined_call_operand.vmem [shape: f32[34,128], index: 2, kind: input, shape index: {}]   ;;  %s1029_s3 = inlined_call_operand.hbm [shape: f32[18,128], index: 3, kind: output, shape index: {}]  }
   0x1   :  { %v17_v0 = vld [vmem:[%s1026_s0 + $0x10] sm:$0x3]  ;;  %714 = vset.pattern.permute.xlu0 %v760_v1 }
   0x2   :  { %21 = vperm.xlu0 %714, %v17_v0  }
   0x3   :  { %8 = vsyncpa [#allocation3], 0  ;;  %v252_v2 = vld [vmem:[%s1027_s1 + $0x80] sm:$0xff]  ;;  %v253_v3 = vld [vmem:[%s1027_s1 + $0x88] sm:$0xff]  ;;  %v761_v0 = vmov 2102212464  }
   0x4   :  { %v236_v4 = vld [vmem:[%s1027_s1] sm:$0xff]  ;;  %v278_v5 = vpack.c.bf16 %v253_v3, %v252_v2  ;;  %v237_v6 = vld [vmem:[%s1027_s1 + $0x8] sm:$0xff]  ;;  %v254_v7 = vld [vmem:[%s1027_s1 + $0x90] sm:$0xff]  ;;  %v762_v2 = vmov 920167782   ;;  %s769_s11 = smov 32  }
   0x5   :  { %v255_v8 = vld [vmem:[%s1027_s1 + $0x98] sm:$0xff]  ;;  %v270_v9 = vpack.c.bf16 %v237_v6, %v236_v4  ;;  %v238_v11 = vld [vmem:[%s1027_s1 + $0x10] sm:$0xff]  ;;  %v256_v13 = vld [vmem:[%s1027_s1 + $0xa0] sm:$0xff]  ;;  %v763_v6 = vmov 1326507024   ;;  %s770_s13 = smov [#allocation2]  }
   0x6   :  { %v279_v10 = vpack.c.bf16 %v255_v8, %v254_v7  ;;  %v239_v12 = vld [vmem:[%s1027_s1 + $0x18] sm:$0xff]  ;;  %628 = vmatprep.subr.bf16.mxu0 %v278_v5  ;;  %v257_v14 = vld [vmem:[%s1027_s1 + $0xa8] sm:$0xff]  ;;  %v240_v17 = vld [vmem:[%s1027_s1 + $0x20] sm:$0xff]  ;;  %v764_v8 = vmov 683565275  }
   0x7   :  { %629 = vmatpush3.bf16.msra.mxu0 %v270_v9  ;;  %v271_v15 = vpack.c.bf16 %v239_v12, %v238_v11  ;;  %v280_v16 = vpack.c.bf16 %v257_v14, %v256_v13  ;;  %v241_v18 = vld [vmem:[%s1027_s1 + $0x28] sm:$0xff]  ;;  %v258_v19 = vld [vmem:[%s1027_s1 + $0xb0] sm:$0xff]  ;;  %v259_v20 = vld [vmem:[%s1027_s1 + $0xb8] sm:$0xff]  ;;  %v766_v13 = vmov 2131351028  }
   0x8   :  { %630 = vmatprep.subr.bf16.mxu0 %v279_v10  ;;  %v272_v21 = vpack.c.bf16 %v241_v18, %v240_v17  ;;  %v281_v22 = vpack.c.bf16 %v259_v20, %v258_v19  ;;  %v242_v23 = vld [vmem:[%s1027_s1 + $0x30] sm:$0xff]  ;;  %v243_v24 = vld [vmem:[%s1027_s1 + $0x38] sm:$0xff]  ;;  %v260_v25 = vld [vmem:[%s1027_s1 + $0xc0] sm:$0xff]  ;;  %v765_v10 = vmov 2475754826  }
   0x9   :  { %v261_v26 = vld [vmem:[%s1027_s1 + $0xc8] sm:$0xff]  ;;  %v273_v27 = vpack.c.bf16 %v243_v24, %v242_v23  ;;  %v244_v29 = vld [vmem:[%s1027_s1 + $0x40] sm:$0xff]  ;;  %v262_v31 = vld [vmem:[%s1027_s1 + $0xd0] sm:$0xff] }
   0xa   :  { %v282_v28 = vpack.c.bf16 %v261_v26, %v260_v25  ;;  %v245_v30 = vld [vmem:[%s1027_s1 + $0x48] sm:$0xff]  ;;  %v263_v32 = vld [vmem:[%s1027_s1 + $0xd8] sm:$0xff]  ;;  %v246_v35 = vld [vmem:[%s1027_s1 + $0x50] sm:$0xff] }
   0xb   :  { %631 = vmatpush3.bf16.msra.mxu0 %v271_v15  ;;  %v274_v33 = vpack.c.bf16 %v245_v30, %v244_v29  ;;  %v283_v34 = vpack.c.bf16 %v263_v32, %v262_v31  ;;  %v247_v36 = vld [vmem:[%s1027_s1 + $0x58] sm:$0xff]  ;;  %v264_v37 = vld [vmem:[%s1027_s1 + $0xe0] sm:$0xff]  ;;  %v265_v38 = vld [vmem:[%s1027_s1 + $0xe8] sm:$0xff] }
   0xc   :  { %632 = vmatprep.subr.bf16.mxu0 %v280_v16  ;;  %v275_v39 = vpack.c.bf16 %v247_v36, %v246_v35  ;;  %v284_v40 = vpack.c.bf16 %v265_v38, %v264_v37  ;;  %v248_v41 = vld [vmem:[%s1027_s1 + $0x60] sm:$0xff]  ;;  %v249_v42 = vld [vmem:[%s1027_s1 + $0x68] sm:$0xff]  ;;  %v266_v43 = vld [vmem:[%s1027_s1 + $0xf0] sm:$0xff] }
   0xd   :  { %v267_v44 = vld [vmem:[%s1027_s1 + $0xf8] sm:$0xff]  ;;  %v276_v45 = vpack.c.bf16 %v249_v42, %v248_v41  ;;  %v250_v47 = vld [vmem:[%s1027_s1 + $0x70] sm:$0xff]  ;;  %v611_v50 = vld [vmem:[%s1028_s2 + $0x21] ss:$0 sm:$0xff] }
   0xe   :  { %v285_v46 = vpack.c.bf16 %v267_v44, %v266_v43  ;;  %v251_v48 = vld [vmem:[%s1027_s1 + $0x78] sm:$0xff] }
   0xf   :  { %633 = vmatpush3.bf16.msra.mxu0 %v272_v21  ;;  %v277_v49 = vpack.c.bf16 %v251_v48, %v250_v47 }
  0x10   :  { %634 = vmatprep.subr.bf16.mxu0 %v281_v22 }
  0x13   :  { %635 = vmatpush3.bf16.msra.mxu0 %v273_v27 }
  0x14   :  { %636 = vmatprep.subr.bf16.mxu0 %v282_v28 }
  0x17   :  { %637 = vmatpush3.bf16.msra.mxu0 %v274_v33 }
  0x18   :  { %638 = vmatprep.subr.bf16.mxu0 %v283_v34 }
  0x1b   :  { %639 = vmatpush3.bf16.msra.mxu0 %v275_v39 }
  0x1c   :  { %640 = vmatprep.subr.bf16.mxu0 %v284_v40 }
  0x1f   :  { %641 = vmatpush3.bf16.msra.mxu0 %v276_v45 }
  0x20   :  { %642 = vmatprep.subr.bf16.mxu0 %v285_v46 }
  0x23   :  { %643 = vmatpush3.bf16.msra.mxu0 %v277_v49 }
  0x81   :  { %v22_v51 = vpop.permute.xlu0 %21 }
  0x82   :  { %v895_v52 = vmul.f32 %v611_v50, %v22_v51 }
  0x84   :  { %v32_v53 = vand.u32 2139095040, %v895_v52  ;;  %v29_v54 = vand.u32 2147483647, %v895_v52  ;;  %vm31_vm7 = vcmp.lt.s32.totalorder %v895_v52, 0  ;;  %vm121_vm15 = vweird.f32 %v895_v52 }
  0x86   :  { %v33_v55 = vshrl.u32 %v32_v53, 23  ;;  %v36_v57 = vand.u32 8388607, %v29_v54  ;;  %vm30_vm8 = vcmp.le.f32.partialorder %v29_v54, 0.7853982 }
  0x88   :  { %v612_v56 = vadd.s32 4294967169, %v33_v55  ;;  %v37_v60 = vor.u32 8388608, %v36_v57 }
  0x8a   :  { %v39_v58 = vadd.s32 1, %v612_v56  ;;  %v77_v4 = vshll.u32 %v37_v60, 8 }
  0x8c   :  { %vm40_vm0 = vcmp.gt.s32.totalorder %v39_v58, 0 }
  0x8d   :  { %v41_v59 = vsel %vm40_vm0, %v39_v58, 0  ;;  %vm768_vm0 = vmmov 0  }
  0x8e   :  { %v43_v61 = vand.u32 31, %v41_v59  ;;  %v42_v62 = vshrl.u32 %v41_v59, 5 }
  0x90   :  { %v44_v63 = vsub.s32 32, %v43_v61  ;;  %v55_v1 = vshll.u32 %v761_v0, %v43_v61  ;;  %v58_v3 = vshll.u32 %v762_v2, %v43_v61  ;;  %v46_v9 = vshll.u32 %v764_v8, %v43_v61 }
  0x91   :  { %v49_v12 = vshll.u32 %v765_v10, %v43_v61  ;;  %v52_v15 = vshll.u32 %v766_v13, %v43_v61  ;;  %vm64_vm1 = vcmp.lt.s32.totalorder %v42_v62, 4  ;;  %vm61_vm2 = vcmp.lt.s32.totalorder %v42_v62, 1 }
  0x92   :  { %v56_v5 = vshrl.u32 %v762_v2, %v44_v63  ;;  %v59_v7 = vshrl.u32 %v763_v6, %v44_v63  ;;  %v47_v11 = vshrl.u32 %v765_v10, %v44_v63  ;;  %v50_v14 = vshrl.u32 %v766_v13, %v44_v63 }
  0x93   :  { %v53_v16 = vshrl.u32 %v761_v0, %v44_v63  ;;  %v45_v20 = vshrl.u32 %v764_v8, %v44_v63  ;;  %vm62_vm3 = vcmp.lt.s32.totalorder %v42_v62, 2  ;;  %vm63_vm4 = vcmp.lt.s32.totalorder %v42_v62, 3 }
  0x94   :  { %v57_v17 = vor.u32 %v56_v5, %v55_v1  ;;  %v60_v18 = vor.u32 %v59_v7, %v58_v3  ;;  %v48_v19 = vor.u32 %v47_v11, %v46_v9  ;;  %v51_v21 = vor.u32 %v50_v14, %v49_v12 }
  0x95   :  { %v54_v22 = vor.u32 %v53_v16, %v52_v15 }
  0x96   :  { %v70_v23 = vsel %vm64_vm1, %v57_v17, 920167782  ;;  %v74_v24 = vsel %vm64_vm1, %v60_v18, 1326507024  ;;  %v69_v26 = vsel %vm61_vm2, %v48_v19, %v51_v21  ;;  %v65_v29 = vsel %vm61_vm2, %v45_v20, %v48_v19 }
  0x97   :  { %v66_v25 = vsel %vm64_vm1, %v54_v22, 2102212464  ;;  %v71_v27 = vsel %vm63_vm4, %v54_v22, %v70_v23  ;;  %v73_v28 = vsel %vm61_vm2, %v51_v21, %v54_v22  ;;  %v75_v32 = vsel %vm63_vm4, %v57_v17, %v74_v24  ;;  %v337_v24 = vld [vmem:[%s1027_s1 + $0x100] sm:$0xff] }
  0x98   :  { %v67_v30 = vsel %vm63_vm4, %v51_v21, %v66_v25  ;;  %v72_v31 = vsel %vm62_vm3, %v69_v26, %v71_v27  ;;  %v76_v33 = vsel %vm62_vm3, %v73_v28, %v75_v32  ;;  %v338_v25 = vld [vmem:[%s1027_s1 + $0x108] sm:$0xff]  ;;  %v767_v27 = vmov 0.0   ;;  %v340_v28 = vld [vmem:[%s1027_s1 + $0x118] sm:$0xff] }
  0x99   :  { %v901_v34 = vmul.u32.u64.low %v77_v4, %v72_v31  ;;  %v902_v35 = vmul.u32.u64.high %v77_v4, %v72_v31, %v901_v34  ;;  %v904_v36 = vmul.u32.u64.low %v77_v4, %v76_v33  ;;  %v905_v37 = vmul.u32.u64.high %v77_v4, %v76_v33, %v904_v36  ;;  %663 = vmatprep.subr.bf16.mxu1 %v767_v27  ;;  %667 = vmatprep.mubr.msk.bf16.mxu1 %vm768_vm0, %v767_v27  ;;  %v393_v31 = vld [vmem:[%s1026_s0 + $0x8] sm:$0xff] }
  0x9a   :  { %v68_v38 = vsel %vm62_vm3, %v65_v29, %v67_v30  ;;  %v342_v26 = vpack.c.bf16 %v338_v25, %v337_v24  ;;  %v392_v30 = vld [vmem:[%s1026_s0] sm:$0xff]  ;;  %vm348_vm1 = vcmask 261120   ;;  %vm476_vm2 = vcmask 1043456   ;;  %s600_s0 = sshll.u32 %s770_s13, 4  ;;  %s601_s0 = int_to_ptr.vmem [resolvable:$true] %s600_s0 }
  0x9b   :  { %v87_v39 = vadd.s32 1, %v902_v35  ;;  %v84_v40 = vmul.u32 %v77_v4, %v68_v38  ;;  %vm86_vm5 = vc.u32 %v905_v37, %v901_v34  ;;  %v85_v53 = vadd.s32 %v901_v34, %v905_v37  ;;  %v945_v37 = vld [vmem:[%s1027_s1 + $0x168] sm:$0xff]  ;;  %v535_v25 = vld [vmem:[%s1028_s2] sm:$0xff]  ;;  %s736_s14 = scalar_lea.vmem %s601_s0, 384  ;;  %p741_p1 = scmp.lt.s32.totalorder %s601_s0, %s601_s0 }
  0x9c   :  { %664 = vmatpush3.bf16.msra.mxu1 %v342_v26  ;;  %v398_v32 = vpack.c.bf16 %v393_v31, %v392_v30  ;;  %v715_v33 = vpack.i.bf16 %v393_v31, %v392_v30  ;;  %v286_v34 = vlaneseq  ;;  %vm472_vm3 = vcmask 326656   ;;  %v536_v26 = vld [vmem:[%s1028_s2 + $0x8] sm:$0xff]  ;;  %p737_p0 = scmp.ne.s32.totalorder %s601_s0, %s736_s14  ;;  %p742_p2 = scmp.lt.s32.totalorder %s736_s14, %s736_s14 }
  0x9d   :  { %v88_v41 = vsel %vm86_vm5, %v87_v39, %v902_v35  ;;  %665 = vmatprep.subr.bf16.mxu1 %v767_v27 }
  0x9e   :  { %v89_v42 = vadd.s32 %v88_v41, %v84_v40  ;;  %716 = vrot.lane.b32.xlu0 %v715_v33, %s769_s11  ;;  %v939_v35 = vshrl.u32 %v286_v34, 7  ;;  %p743_p3 = por %p742_p2, %p741_p1 }
  0xa0   :  { %v90_v43 = vadd.s32 536870912, %v89_v42  ;;  %v288_v36 = vsub.s32 0, %v939_v35  ;;  %v470_v31 = vsub.s32 3, %v939_v35  ;;  %p744_p4 = pnand %p743_p3, %p737_p0 }
  0xa2   :  { %v91_v44 = vshrl.u32 %v90_v43, 30  ;;  %v289_v39 = vrot.slane %v945_v37, %v288_v36 }
  0xa4   :  { %v92_v45 = vshll.u32 %v91_v44, 30  ;;  %v115_v2 = vsub.s32 4, %v91_v44 }
  0xa6   :  { %v93_v46 = vsub.s32 %v89_v42, %v92_v45  ;;  %v116_v5 = vsel %vm31_vm7, %v115_v2, %v91_v44 }
  0xa7   :  { %v118_v7 = vsel %vm30_vm8, 0, %v116_v5 }
  0xa8   :  { %v95_v47 = vsub.s32 0, %v93_v46  ;;  %v225_v8 = vadd.s32 3, %v118_v7  ;;  %v122_v9 = vand.u32 3, %v118_v7 }
  0xaa   :  { %v613_v48 = vmin.u32 %v95_v47, %v93_v46  ;;  %v226_v10 = vand.u32 3, %v225_v8  ;;  %vm127_vm9 = vcmp.eq.s32.totalorder %v122_v9, 2  ;;  %vm124_vm11 = vcmp.eq.s32.totalorder %v122_v9, 0 }
  0xab   :  { %vm123_vm13 = vcmp.lt.s32.totalorder %v122_v9, 2  ;;  %v403_v9 = vsub.s32 2, %v939_v35 }
  0xac   :  { %v97_v49 = vclz %v613_v48  ;;  %vm231_vm10 = vcmp.eq.s32.totalorder %v226_v10, 2  ;;  %vm228_vm12 = vcmp.eq.s32.totalorder %v226_v10, 0  ;;  %vm227_vm14 = vcmp.lt.s32.totalorder %v226_v10, 2  ;;  %v394_v48 = vld [vmem:[%s1027_s1 + $0x120] sm:$0xff] }
  0xae   :  { %v614_v50 = vadd.s32 4294967294, %v97_v49  ;;  %v395_v49 = vld [vmem:[%s1027_s1 + $0x128] sm:$0xff] }
  0xb0   :  { %vm615_vm6 = vcmp.lt.s32.totalorder %v614_v50, 0 }
  0xb1   :  { %v100_v51 = vsel %vm615_vm6, 0, %v614_v50 }
  0xb2   :  { %v101_v55 = vsub.s32 32, %v100_v51  ;;  %v105_v56 = vsub.s32 4294967266, %v100_v51  ;;  %v102_v57 = vshll.u32 %v93_v46, %v100_v51 }
  0xb4   :  { %v103_v58 = vshrl.u32 %v85_v53, %v101_v55  ;;  %v106_v59 = vadd.s32 127, %v105_v56  ;;  %v399_v53 = vpack.c.bf16 %v395_v49, %v394_v48  ;;  %v396_v56 = vld [vmem:[%s1027_s1 + $0x130] sm:$0xff]  ;;  %v626_v49 = vld [vmem:[%s1028_s2 + $0x20] ss:$0 sm:$0xff] }
  0xb6   :  { %v104_v60 = vor.u32 %v103_v58, %v102_v57  ;;  %v107_v61 = vshll.u32 %v106_v59, 23  ;;  %v397_v57 = vld [vmem:[%s1027_s1 + $0x138] sm:$0xff]  ;;  %v459_v59 = vld [vmem:[%s1027_s1 + $0x140] sm:$0xff] }
  0xb7   :  { %v400_v58 = vpack.c.bf16 %v397_v57, %v396_v56 }
  0xb8   :  { %v108_v62 = vor.u32 4788187, %v107_v61  ;;  %v111_v0 = vcvt.s32.f32 %v104_v60  ;;  %v460_v60 = vld [vmem:[%s1027_s1 + $0x148] sm:$0xff] }
  0xb9   :  { %v465_v61 = vpack.c.bf16 %v460_v60, %v459_v59 }
  0xba   :  { %v109_v63 = vand.u32 2147483647, %v108_v62  ;;  %v461_v62 = vld [vmem:[%s1027_s1 + $0x150] sm:$0xff] }
  0xbc   :  { %v112_v1 = vmul.f32 %v111_v0, %v109_v63  ;;  %v462_v63 = vld [vmem:[%s1027_s1 + $0x158] sm:$0xff] }
  0xbd   :  { %v466_v0 = vpack.c.bf16 %v462_v63, %v461_v62 }
  0xbe   :  { %v113_v3 = vxor.u32 2147483648, %v112_v1 }
  0xc0   :  { %v114_v4 = vsel %vm31_vm7, %v113_v3, %v112_v1  ;;  %v463_v1 = vld [vmem:[%s1027_s1 + $0x160] sm:$0xff] }
  0xc1   :  { %v117_v6 = vsel %vm30_vm8, %v895_v52, %v114_v4  ;;  %v339_v52 = vld [vmem:[%s1027_s1 + $0x110] sm:$0xff]  ;;  %v467_v2 = vpack.c.bf16 %v463_v1, %v463_v1  ;;  %v346_v4 = vsub.s32 1, %v939_v35 }
  0xc2   :  { %720 = vcosq.f32 %v117_v6  ;;  %v343_v29 = vpack.c.bf16 %v340_v28, %v339_v52  ;;  %v540_v52 = vpack.c.bf16 %v536_v26, %v535_v25  ;;  %v537_v28 = vld [vmem:[%s1028_s2 + $0x10] sm:$0xff] }
  0xc3   :  { %722 = vsinq.f32 %v117_v6  ;;  %v478_v3 = vsel %vm476_vm2, %v467_v2, 0  ;;  %v347_v5 = vrot.slane %v945_v37, %v346_v4 }
  0xc4   :  { %666 = vmatpush3.bf16.msra.mxu1 %v343_v29  ;;  %v538_v29 = vld [vmem:[%s1028_s2 + $0x18] sm:$0xff] }
  0xc5   :  { %671 = vmatprep.subr.bf16.mxu1 %v767_v27  ;;  %v541_v30 = vpack.c.bf16 %v538_v29, %v537_v28 }
  0xcc   :  { %v721_v11 = vpop.eup %720 }
  0xcd   :  { %v723_v12 = vpop.eup %722  ;;  %v128_v13 = vxor.u32 2147483648, %v721_v11 }
  0xce   :  { %v125_v14 = vxor.u32 2147483648, %v723_v12 }
  0xcf   :  { %v129_v15 = vsel %vm127_vm9, %v128_v13, %v723_v12  ;;  %v233_v54 = vsel %vm231_vm10, %v128_v13, %v723_v12  ;;  %v404_v13 = vrot.slane %v945_v37, %v403_v9 }
  0xd0   :  { %v126_v16 = vsel %vm124_vm11, %v721_v11, %v125_v14  ;;  %v230_v17 = vsel %vm228_vm12, %v721_v11, %v125_v14 }
  0xd1   :  { %v130_v18 = vsel %vm123_vm13, %v126_v16, %v129_v15  ;;  %v234_v19 = vsel %vm227_vm14, %v230_v17, %v233_v54 }
  0xd2   :  { %v131_v20 = vsel %vm121_vm15, nan, %v130_v18  ;;  %v235_v21 = vsel %vm121_vm15, nan, %v234_v19 }
  0xd3   :  { %v268_v22 = vpack.c.bf16 %v131_v20, %v131_v20  ;;  %v269_v23 = vpack.c.bf16 %v235_v21, %v235_v21 }
  0xd5   :  { %322 = vmatprep.mubr.bf16.mxu0 %v269_v23 }
  0xd6   :  { %323 = vmatmul.mubr.bf16.vlgmr.msra.gmra.mrb[0].mxu0 %v268_v22 }
 0x110   :  { %v717_v14 = vpop.permute.xlu0 %716 }
 0x111   :  { %v719_v54 = vunpack.i.h.bf16 %v717_v14  ;;  %v718_v16 = vunpack.i.l.bf16 %v717_v14 }
 0x1a9   :  { %v644_v38 = vpop.f32.mrb[0].mxu0 }
 0x1aa   :  { %v645_v40 = vpop.f32.mrb[1].mxu0 }
 0x1ab   :  { %v646_v41 = vadd.f32 %v645_v40, %v644_v38  ;;  %v647_v42 = vpop.f32.mrb[2].mxu0 }
 0x1ac   :  { %v648_v43 = vpop.f32.mrb[3].mxu0 }
 0x1ad   :  { %v325_v44 = vadd.f32 %v646_v41, %v289_v39 }
 0x1af   :  { %v620_v45 = vmul.f32 -1.442695, %v325_v44 }
 0x1b1   :  { %724 = vpow2.f32 %v620_v45 }
 0x1bb   :  { %v725_v46 = vpop.eup %724 }
 0x1bc   :  { %v333_v47 = vadd.f32 1.0, %v725_v46 }
 0x1be   :  { %726 = vrcp.f32 %v333_v47 }
 0x1c8   :  { %v727_v50 = vpop.eup %726 }
 0x1c9   :  { %v336_v51 = vmul.f32 %v727_v50, %v325_v44 }
 0x1cb   :  { %v341_v55 = vpack.c.bf16 %v336_v51, %v336_v51 }
 0x1cd   :  { %668 = vmatmul.mubr.msk.bf16.vlgmr.msra.gmra.mrb[0].mxu1 %vm348_vm1, %v341_v55 }
 0x1ce   :  { %672 = vmatpush3.bf16.msra.mxu1 %v399_v53  ;;  %675 = vmatprep.mubr.msk.bf16.mxu1 %vm768_vm0, %v767_v27 }
 0x1cf   :  { %673 = vmatprep.subr.bf16.mxu1 %v767_v27 }
 0x1d2   :  { %674 = vmatpush3.bf16.msra.mxu1 %v400_v58 }
 0x1d3   :  { %679 = vmatprep.subr.bf16.mxu1 %v767_v27 }
 0x1d5   :  { %676 = vmatmul.mubr.msk.bf16.vlgmr.msra.gmra.mrb[4].mxu1 %vm348_vm1, %v398_v32  ;;  %v471_v32 = vrot.slane %v945_v37, %v470_v31 }
 0x1d6   :  { %685 = vmatprep.mubr.msk.bf16.mxu1 %vm768_vm0, %v767_v27  ;;  %680 = vmatpush3.bf16.msra.mxu1 %v465_v61 }
 0x1d7   :  { %681 = vmatprep.subr.bf16.mxu1 %v767_v27 }
 0x1da   :  { %682 = vmatpush3.bf16.msra.mxu1 %v466_v0 }
 0x1db   :  { %683 = vmatprep.subr.bf16.mxu1 %v767_v27 }
 0x1de   :  { %684 = vmatpush3.bf16.msra.mxu1 %v478_v3 }
 0x1df   :  { %689 = vmatprep.subr.bf16.mxu1 %v767_v27 }
 0x2a0   :  { %v386_v6 = vpop.f32.mrb[0].mxu1 }
 0x2a1   :  { %v387_v7 = vadd.f32 %v386_v6, %v347_v5  ;;  %v669_v8 = vpop.f32.mrb[1].mxu1 }
 0x2a2   :  { %v389_v10 = vpop.f32.mrb[2].mxu1 }
 0x2a3   :  { %v591_v11 = vsel %vm348_vm1, %v387_v7, 0.0  ;;  %v670_v12 = vpop.f32.mrb[3].mxu1 }
 0x2a4   :  { %594 = vst [vmem:[#allocation2 + $0x10] sm:$0x3] %v591_v11 }
 0x2a8   :  { %v442_v15 = vpop.f32.mrb[4].mxu1 }
 0x2a9   :  { %v443_v17 = vadd.f32 %v442_v15, %v404_v13  ;;  %v677_v18 = vpop.f32.mrb[5].mxu1 }
 0x2aa   :  { %v445_v19 = vpop.f32.mrb[6].mxu1 }
 0x2ab   :  { %v446_v20 = vadd.f32 %v445_v19, %v404_v13  ;;  %v678_v21 = vpop.f32.mrb[7].mxu1  ;;  %v457_v22 = vsel %vm348_vm1, %v443_v17, %v718_v16 }
 0x2ad   :  { %v458_v23 = vsel %vm348_vm1, %v446_v20, %v719_v54 }
 0x2ae   :  { %v464_v24 = vpack.c.bf16 %v458_v23, %v457_v22 }
 0x2b0   :  { %686 = vmatmul.mubr.msk.bf16.vlgmr.msra.gmra.mrb[8].mxu1 %vm472_vm3, %v464_v24 }
 0x2b1   :  { %693 = vmatprep.mubr.msk.bf16.mxu1 %vm768_vm0, %v767_v27  ;;  %690 = vmatpush3.bf16.msra.mxu1 %v540_v52 }
 0x2b2   :  { %691 = vmatprep.subr.bf16.mxu1 %v767_v27 }
 0x2b5   :  { %692 = vmatpush3.bf16.msra.mxu1 %v541_v30 }
 0x383   :  { %v514_v33 = vpop.f32.mrb[8].mxu1 }
 0x384   :  { %v515_v34 = vadd.f32 %v514_v33, %v471_v32  ;;  %v687_v36 = vpop.f32.mrb[9].mxu1 }
 0x385   :  { %v517_v38 = vpop.f32.mrb[10].mxu1 }
 0x386   :  { %v624_v39 = vmul.f32 -1.442695, %v515_v34  ;;  %v518_v27 = vadd.f32 %v517_v38, %v471_v32  ;;  %v688_v40 = vpop.f32.mrb[11].mxu1 }
 0x388   :  { %728 = vpow2.f32 %v624_v39  ;;  %v625_v41 = vmul.f32 -1.442695, %v518_v27 }
 0x38a   :  { %730 = vpow2.f32 %v625_v41 }
 0x392   :  { %v729_v42 = vpop.eup %728 }
 0x393   :  { %v527_v43 = vadd.f32 1.0, %v729_v42 }
 0x394   :  { %v731_v44 = vpop.eup %730 }
 0x395   :  { %732 = vrcp.f32 %v527_v43  ;;  %v528_v45 = vadd.f32 1.0, %v731_v44 }
 0x397   :  { %734 = vrcp.f32 %v528_v45 }
 0x39f   :  { %v733_v46 = vpop.eup %732 }
 0x3a0   :  { %v533_v47 = vmul.f32 %v733_v46, %v515_v34 }
 0x3a1   :  { %v735_v35 = vpop.eup %734 }
 0x3a2   :  { %v534_v37 = vmul.f32 %v735_v35, %v518_v27 }
 0x3a4   :  { %v539_v48 = vpack.c.bf16 %v534_v37, %v533_v47 }
 0x3a6   :  { %694 = vmatmul.mubr.msk.bf16.vlgmr.msra.gmra.mrb[12].mxu1 %vm348_vm1, %v539_v48 }
 0x479   :  { %v584_v50 = vpop.f32.mrb[12].mxu1 }
 0x47a   :  { %v585_v51 = vadd.f32 %v626_v49, %v584_v50  ;;  %v695_v53 = vpop.f32.mrb[13].mxu1 }
 0x47b   :  { %v587_v55 = vpop.f32.mrb[14].mxu1 }
 0x47c   :  { %592 = vst [vmem:[#allocation2] sm:$0xff] %v585_v51  ;;  %v588_v56 = vadd.f32 %v626_v49, %v587_v55  ;;  %v696_v57 = vpop.f32.mrb[15].mxu1 }
 0x47e   :  { %593 = vst [vmem:[#allocation2 + $0x8] sm:$0xff] %v588_v56 }
 0x47f   :  { %747 = shalt.err (!%p744_p4)
}
 0x480   :  { %s748_s16 = scalar_lea.hbm %s1029_s3, 384 }
 0x481   :  { %p749_p5 = scmp.ne.s32.totalorder %s1029_s3, %s748_s16  ;;  %p752_p6 = scmp.lt.u32.totalorder %s748_s16, %s1029_s3 }
 0x483   :  { %p754_p7 = pnand %p752_p6, %p749_p5 }
 0x485   :  { %757 = shalt.err (!%p754_p7)
}
 0x486   :  { %s771_s21 = smov 128   ;;  %s772_s22 = smov 8  }
 0x487   :  { %606 = dma.vmem_to_hbm [thread:$0]  %s601_s0, 384, %s1029_s3, [#allocation3], %s771_s21, %s771_s21, %s772_s22  }
 0x488   :  { %758 = dma.done.wait [#allocation3], 384  }
 0x489   :  { %759 = vsyncadd [#allocation3], 4294966912 }
 0x48a   :  { %610 = vsyncpa [#allocation3], 1 }

</bundles_post_ra>
